<compile_context>
chip_gen: v6e
topology: v6e:2x2x1
jax: 0.10.0
libtpu: 0.0.40
codegen_flags: <defaults>
</compile_context>

<pallas_src>
import jax
import jax.numpy as jnp
from jax.experimental import pallas as pl
from jax.experimental.pallas import tpu as pltpu


def _round_up(x, m):
    return ((x + m - 1) // m) * m


# --------------------------- kernels ---------------------------

def _linear_single_kernel(x_ref, w_ref, b_ref, o_ref):
    # Whole K in one grid step: no accumulator scratch, no zero-init.
    acc = jnp.dot(x_ref[...], w_ref[...], preferred_element_type=jnp.float32)
    o_ref[...] = (acc + b_ref[...]).astype(o_ref.dtype)


def _linear_acc_kernel(x_ref, w_ref, b_ref, o_ref, acc_ref):
    # K is tiled: accumulate in f32 VMEM scratch, add bias + cast on last step.
    @pl.when(pl.program_id(2) == 0)
    def _():
        acc_ref[...] = jnp.zeros_like(acc_ref)

    acc_ref[...] += jnp.dot(x_ref[...], w_ref[...],
                            preferred_element_type=jnp.float32)

    @pl.when(pl.program_id(2) == pl.num_programs(2) - 1)
    def _():
        o_ref[...] = (acc_ref[...] + b_ref[...]).astype(o_ref.dtype)


# --------------------------- wrapper ---------------------------

def linear(x, w, b=None, *, out_dtype=None, compute_dtype=None,
           tm=None, tn=None, tk=None):
    """y = x @ w.T (+ b)   with x: [B, K], w: [N, K] (PyTorch layout), b: [N] | None."""
    B, K = x.shape
    N, K2 = w.shape
    assert K == K2, "feature-dim mismatch"
    out_dtype = out_dtype if out_dtype is not None else x.dtype

    # (1) Pre-transpose the weight once in the wrapper -> plain MK @ KN contraction.
    wt = jnp.asarray(w).T                                             # [K, N]
    bias = jnp.zeros((N,), jnp.float32) if b is None else jnp.asarray(b, jnp.float32)

    # (2) Lane/sublane-dense padded shapes: M -> x8 sublanes, K/N -> x128 lanes.
    Mp = _round_up(B, 8)
    Kp = _round_up(K, 128)
    Np = _round_up(N, 128)

    # (3) Tile defaults: take the whole (padded) dim while it is modest, else
    #     fall back to 256 (M/N) / 512 (K) aligned tiles.  Worst case f32
    #     footprint (tm=256, tn=1024, tk=1024, double-buffered) is ~12 MiB.
    if tm is None:
        tm = Mp if Mp <= 256 else 256
    if tn is None:
        tn = Np if Np <= 1024 else 256
    if tk is None:
        tk = Kp if Kp <= 1024 else 512
    Mp = _round_up(Mp, tm)
    Np = _round_up(Np, tn)
    Kp = _round_up(Kp, tk)

    # (4) v7x has 2 TensorCores: make sure the parallel grid has >= 2 blocks
    #     when it would otherwise be a single block.
    if Mp // tm == 1 and Np // tn == 1 and Mp >= 16 and Mp % 16 == 0:
        tm = Mp // 2

    # Zero-pad operands (zeros along K are exact; extra M rows / N cols are
    # sliced off the result; padded bias columns are zero).
    x_p = x if (Mp == B and Kp == K) else jnp.pad(x, ((0, Mp - B), (0, Kp - K)))
    w_p = wt if (Kp == K and Np == N) else jnp.pad(wt, ((0, Kp - K), (0, Np - N)))
    b_p = (bias if Np == N else jnp.pad(bias, (0, Np - N))).reshape(1, Np)

    if compute_dtype is not None:          # e.g. jnp.bfloat16 on v6e/v7x
        x_p = x_p.astype(compute_dtype)
        w_p = w_p.astype(compute_dtype)

    nk = Kp // tk
    if nk == 1:
        # Fast path: no K grid axis, no accumulator.
        grid = (Mp // tm, Np // tn)
        in_specs = [
            pl.BlockSpec((tm, Kp), lambda i, j: (i, 0)),
            pl.BlockSpec((Kp, tn), lambda i, j: (0, j)),
            pl.BlockSpec((1, tn), lambda i, j: (0, j)),
        ]
        out_specs = pl.BlockSpec((tm, tn), lambda i, j: (i, j))
        kernel = _linear_single_kernel
        scratch = []
        dim_sem = ("parallel", "parallel")
    else:
        grid = (Mp // tm, Np // tn, nk)
        in_specs = [
            pl.BlockSpec((tm, tk), lambda i, j, k: (i, k)),
            pl.BlockSpec((tk, tn), lambda i, j, k: (k, j)),
            pl.BlockSpec((1, tn), lambda i, j, k: (0, j)),
        ]
        out_specs = pl.BlockSpec((tm, tn), lambda i, j, k: (i, j))
        kernel = _linear_acc_kernel
        scratch = [pltpu.VMEM((tm, tn), jnp.float32)]
        dim_sem = ("parallel", "parallel", "arbitrary")

    y_p = pl.pallas_call(
        kernel,
        out_shape=jax.ShapeDtypeStruct((Mp, Np), out_dtype),
        grid_spec=pltpu.PrefetchScalarGridSpec(
            num_scalar_prefetch=0,
            grid=grid,
            in_specs=in_specs,
            out_specs=out_specs,
            scratch_shapes=scratch,
        ),
        compiler_params=pltpu.CompilerParams(
            dimension_semantics=dim_sem,
            vmem_limit_bytes=32 * 1024 * 1024,   # headroom; safe on v5e/v6e/v7x
        ),
    )(x_p, w_p, b_p)

    return y_p[:B, :N]


# ----------------- module-level forward functions -----------------

def kaiming_normal(key, out_dim, in_dim, dtype=jnp.float32):
    # torch.nn.init.kaiming_normal_ default (fan_in, a=0): std = sqrt(2 / fan_in)
    std = (2.0 / in_dim) ** 0.5
    return (jax.random.normal(key, (out_dim, in_dim)) * std).astype(dtype)


def fclayer_forward(x, fc1_w):
    """FClayer.forward: F.linear(input_x, fc1_w)  (no bias)."""
    return linear(x, fc1_w)


def classifier_forward(x, fc1_w, fc1_b):
    """Classifier.forward: F.linear(input_x, fc1_w, fc1_b)."""
    return linear(x, fc1_w, fc1_b)


def l2_normalize(x, eps=1e-12):
    # F.normalize(x, dim=1)
    n = jnp.sqrt(jnp.sum(x * x, axis=1, keepdims=True))
    return x / jnp.maximum(n, eps)


def learner_st_generate(params, feat_b):
    """Deterministic dense path of Learner(mode='st') (eval / generation stage):
         sem_b_1    = fc_en(feat_b)
         sem_n_1_1  = trans(sem_b_1)
         feat_n_1_1 = fc_de(sem_n_1_1)
         logits     = classifier(F.normalize(feat_n_1_1))
    """
    # TODO(synk): KMeans clustering, PuLP route_plan LP, the inner Adam/autograd
    # fine-tuning loops and sklearn LR/SVM/KNN heads are host-side control flow
    # with no Pallas equivalent; only the dense linear-layer compute is kernelized.
    sem_b_1 = fclayer_forward(feat_b, params["fc_en_w"])
    sem_n_1_1 = linear(sem_b_1, params["trans_w"], params["trans_b"])
    feat_n_1_1 = fclayer_forward(sem_n_1_1, params["fc_de_w"])
    feat = l2_normalize(feat_n_1_1)
    logits = classifier_forward(feat, params["cls_w"], params["cls_b"])
    return logits, sem_n_1_1, feat_n_1_1


if __name__ == "__main__":
    key = jax.random.PRNGKey(0)
    ks = jax.random.split(key, 8)

    way, n_per_cls = 5, 2
    z_dim, z_sem = 640, 300            # Learner defaults (non-cub dataset)
    B = way * n_per_cls                # small base batch

    feat_b = jax.random.normal(ks[0], (B, z_dim), dtype=jnp.float32)

    params = {
        "fc_en_w": kaiming_normal(ks[1], z_sem, z_dim),   # FClayer(z_sem, z_dim)
        "trans_w": kaiming_normal(ks[2], z_sem, z_sem),   # nn.Linear(z_sem, z_sem)
        "trans_b": (jax.random.normal(ks[3], (z_sem,)) * 0.5).astype(jnp.float32),
        "fc_de_w": kaiming_normal(ks[4], z_dim, z_sem),   # FClayer(z_dim, z_sem)
        "cls_w": kaiming_normal(ks[5], way, z_dim),       # Classifier(way, z_dim)
        "cls_b": (jax.random.normal(ks[6], (way,)) * 0.5).astype(jnp.float32),
    }

    logits, sem_n_1_1, feat_n_1_1 = jax.block_until_ready(
        learner_st_generate(params, feat_b))

    # Pure-JAX reference of the same forward chain.
    sem_ref = feat_b @ params["fc_en_w"].T
    semn_ref = sem_ref @ params["trans_w"].T + params["trans_b"]
    featn_ref = semn_ref @ params["fc_de_w"].T
    feat_ref = featn_ref / jnp.maximum(
        jnp.sqrt(jnp.sum(featn_ref * featn_ref, axis=1, keepdims=True)), 1e-12)
    logits_ref = feat_ref @ params["cls_w"].T + params["cls_b"]

    assert sem_n_1_1.shape == (B, z_sem)
    assert feat_n_1_1.shape == (B, z_dim)
    assert logits.shape == (B, way)
    assert jnp.allclose(sem_n_1_1, semn_ref, atol=1e-2, rtol=1e-2)
    assert jnp.allclose(feat_n_1_1, featn_ref, atol=1e-2, rtol=1e-2)
    assert jnp.allclose(logits, logits_ref, atol=1e-2, rtol=1e-2)

    print("KERNEL_OK")
</pallas_src>

<mosaic_0001>
module attributes {stable_mosaic.version = 11 : i64} {
  func.func @_linear_single_kernel(%arg0: i32, %arg1: i32, %arg2: memref<8x640xf32, #tpu.memory_space<vmem>>, %arg3: memref<640x384xf32, #tpu.memory_space<vmem>>, %arg4: memref<1x384xf32, #tpu.memory_space<vmem>>, %arg5: memref<8x384xf32, #tpu.memory_space<vmem>>) attributes {dimension_semantics = [#tpu.dimension_semantics<parallel>, #tpu.dimension_semantics<parallel>], iteration_bounds = array<i64: 2, 1>, scalar_prefetch = 0 : i64, scratch_operands = 0 : i64, tpu.core_type = #tpu.core_type<tc>, window_params = [{transform_indices = @transform_0, window_bounds = array<i64: 8, 640>}, {transform_indices = @transform_1, window_bounds = array<i64: 640, 384>}, {transform_indices = @transform_2, window_bounds = array<i64: 1, 384>}, {transform_indices = @transform_3, window_bounds = array<i64: 8, 384>}]} {
    %c0 = arith.constant 0 : index
    %c0_0 = arith.constant 0 : index
    %0 = vector.load %arg2[%c0, %c0_0] : memref<8x640xf32, #tpu.memory_space<vmem>>, vector<8x640xf32>
    %c0_1 = arith.constant 0 : index
    %c0_2 = arith.constant 0 : index
    %1 = vector.load %arg3[%c0_1, %c0_2] : memref<640x384xf32, #tpu.memory_space<vmem>>, vector<640x384xf32>
    %cst = arith.constant dense<0.000000e+00> : vector<8x384xf32>
    %2 = tpu.matmul %0, %1, %cst {dimension_numbers = #tpu.dot_dimension_numbers<[1], [0], [0], [1], [0, 0, 1, 1], [], []>} : vector<8x640xf32>, vector<640x384xf32>, vector<8x384xf32> -> vector<8x384xf32>
    %c0_3 = arith.constant 0 : index
    %c0_4 = arith.constant 0 : index
    %3 = vector.load %arg4[%c0_3, %c0_4] : memref<1x384xf32, #tpu.memory_space<vmem>>, vector<1x384xf32>
    %4 = vector.broadcast %3 : vector<1x384xf32> to vector<8x384xf32>
    %5 = arith.addf %2, %4 : vector<8x384xf32>
    %c0_5 = arith.constant 0 : index
    %c0_6 = arith.constant 0 : index
    %6 = vector.load %arg5[%c0_5, %c0_6] : memref<8x384xf32, #tpu.memory_space<vmem>>, vector<8x384xf32>
    tpu.vector_store %arg5[%c0_5, %c0_6], %5 {strides = array<i32>} : memref<8x384xf32, #tpu.memory_space<vmem>>, vector<8x384xf32>,
    return
  }
  func.func @transform_0(%arg0: i32, %arg1: i32) -> (i32, i32) {
    %c0_i32 = arith.constant 0 : i32
    %c0_i32_0 = arith.constant 0 : i32
    return %arg0, %c0_i32 : i32, i32
  }
  func.func @transform_1(%arg0: i32, %arg1: i32) -> (i32, i32) {
    %c0_i32 = arith.constant 0 : i32
    %c0_i32_0 = arith.constant 0 : i32
    return %c0_i32, %arg1 : i32, i32
  }
  func.func @transform_2(%arg0: i32, %arg1: i32) -> (i32, i32) {
    %c0_i32 = arith.constant 0 : i32
    %c0_i32_0 = arith.constant 0 : i32
    return %c0_i32, %arg1 : i32, i32
  }
  func.func @transform_3(%arg0: i32, %arg1: i32) -> (i32, i32) {
    %c0_i32 = arith.constant 0 : i32
    return %arg0, %arg1 : i32, i32
  }
}

</mosaic_0001>

<bundles_post_ra>
// kernel: tpu_custom_call.1
= control target key start
LH: loop header
LB: loop body
LE: loop exit
PB: predicated region body
PF: predicated region fallthrough
CT: control target
= control target key end

     0   :  { %8 = vsyncpa [#allocation3], 0  ;;  %s1648_s0 = inlined_call_operand.hbm [shape: f32[16,640], index: 0, kind: input, shape index: {}]   ;;  %s1649_s1 = inlined_call_operand.hbm [shape: f32[640,384], index: 1, kind: input, shape index: {}]   ;;  %s1650_s2 = inlined_call_operand.vmem [shape: f32[1,384], index: 2, kind: input, shape index: {}]   ;;  %s1651_s3 = inlined_call_operand.hbm [shape: f32[16,384], index: 3, kind: output, shape index: {}]  }
   0x1   :  { %10 = vsyncpa [#allocation3 + $0x1], 0 }
   0x2   :  { %11 = vsyncpa [#allocation6], 0 }
   0x3   :  { %12 = vsyncpa [#allocation4], 0 }
   0x4   :  { %14 = vsyncpa [#allocation4 + $0x1], 0  ;;  %s1438_s12 = smov 0   ;;  %s1440_s13 = smov 0  }
   0x5   :  { %s1442_s14 = smov 0   ;;  %s1444_s15 = smov 0  }
   0x6   :  { %s1446_s16 = smov 0   ;;  %s1448_s17 = smov 0  }
   0x7 LB: > { %s1055_s18 = sadd.s32 4294967295, %s1409_s17   ;;  %s1056_s19 = sadd.s32 4294967294, %s1409_s17   ;;  %s1409_s17 = sphi %s1448_s17, %s20_s17   ;;  %s1405_s16 = sphi %s1446_s16, %s1667_s16   ;;  %s1401_s15 = sphi %s1444_s15, %s1666_s15   ;;  %s1397_s14 = sphi %s1442_s14, %s1665_s14   ;;  %s1393_s13 = sphi %s1440_s13, %s1664_s13   ;;  %s1389_s12 = sphi %s1438_s12, %s1663_s12  }
   0x8   : > { %p52_p0 = scmp.ne.s32.totalorder %s1393_s13, %s1389_s12  ;;  %p1472_p1 = scmp.eq.s32.totalorder %s1055_s18, 0 }
   0x9   : > { %p1476_p2 = scmp.eq.s32.totalorder %s1055_s18, 1  ;;  %p136_p3 = scmp.eq.s32.totalorder %s1056_s19, 1 }
   0xa   : > { %p1482_p4 = por %p1472_p1, %p52_p0  ;;  %p1057_p5 = scmp.ge.s32.totalorder %s1409_s17, 1 }
   0xb   : > { %p1487_p6 = por %p136_p3, %p52_p0  ;;  %p143_p7 = scmp.lt.s32.totalorder %s1409_s17, 3 }
   0xc   : > { %s1655_s22 = scalar_select %p1482_p4, 1, 0 }
   0xd   : > { %s1656_s23 = scalar_select %p1487_p6, 1, 0 }
   0xe   : > { %p1492_p8 = pnand %p1057_p5, %p143_p7  ;;  %s1411_s25 = smov [#allocation5]  }
   0xf   : > { %s158_s26 = sshll.u32 %s1411_s25, 4  ;;  %p1060_p10 = scmp.ge.s32.totalorder %s1409_s17, 2  ;;  %s159_s26 = int_to_ptr.vmem [resolvable:$true] %s158_s26 }
  0x10   : > { %p1202_p9 = pneg %p1492_p8  ;;  %s32_s28 = sadd.s32 1, %s1405_s16 }
  0x11   : > { %s1282_s29 = scalar_lea.vmem %s159_s26, 30720  ;;  %p1290_p5 = scmp.lt.s32.totalorder %s159_s26, %s159_s26 }
  0x12   : > { %p1501_p11 = pnand %p1202_p9, %p1472_p1  ;;  %p1283_p13 = scmp.ne.s32.totalorder %s159_s26, %s1282_s29 }
  0x13   : > { %p1291_p7 = scmp.lt.s32.totalorder %s1282_s29, %s1282_s29 }
  0x14   : > { %p1273_p12 = pneg %p1501_p11 }
  0x15   : > { %p1292_p6 = por %p1291_p7, %p1290_p5 }
  0x16   : > { %p1285_p0 = pnand %p1283_p13, %p1273_p12 }
  0x18   : > { %p1286_p3 = pneg %p1285_p0 }
  0x1a   : > { %p1293_p4 = pnand %p1292_p6, %p1286_p3 }
  0x1c   : > { %1296 = shalt.err (!%p1293_p4)
}
  0x1d   : > { %s1412_s30 = smov 384   ;;  %s1413_s4 = smov 24  }
  0x1e   : > { %1205 = dma.hbm_to_vmem [thread:$0]  (!%p1501_p11), %s1649_s1, 30720, %s159_s26, [#allocation6], %s1412_s30, %s1412_s30, %s1413_s4  }
  0x1f   : > { %p34_p6 = scmp.ge.s32.totalorder %s32_s28, 2  ;;  %s39_s7 = sadd.s32 1, %s1397_s14 }
  0x20   : > { %p46_p4 = scmp.ne.s32.totalorder %s1397_s14, %s1393_s13  ;;  %p47_p9 = scmp.eq.s32.totalorder %s1409_s17, 0 }
  0x21   : > { %s1669_s28 = smov (%p34_p6, %s32_s28), 0  ;;  %p1215_p0 = scmp.lt.s32.totalorder %s1409_s17, 2 }
  0x22   : > { %p48_p12 = por %p47_p9, %p46_p4  ;;  %p1521_p13 = por %p1476_p2, %p46_p4 }
  0x23   : > { %s36_s9 = ssub.s32 %s1405_s16, %s1669_s28  ;;  %s180_s10 = sand.u32 1, %s1397_s14  }
  0x24   : > { %p37_p3 = scmp.eq.s32.totalorder %s36_s9, 0  ;;  %s1189_s11 = smul.u32 40, %s180_s10 }
  0x25   : > { %s1190_s19 = smul.u32 640, %s1405_s16  ;;  %p1533_p11 = pnand %p1215_p0, %p48_p12 }
  0x26   : > { %s1530_s18 = scalar_select %p37_p3, %s1397_s14, %s39_s7  }
  0x27   : > { %s184_s25 = scalar_lea.vmem [#allocation2], %s1189_s11  ;;  %s190_s30 = scalar_lea.hbm %s1648_s0, %s1190_s19 }
  0x28   : > { %s192_s26 = sshll.u32 %s184_s25, 4  ;;  %s181_s4 = scalar_lea.sflag [#allocation3], %s180_s10  ;;  %s193_s26 = int_to_ptr.vmem [resolvable:$true] %s192_s26 }
  0x29   : > { %p1299_p2 = pneg %p1533_p11  ;;  %s1310_s5 = scalar_lea.vmem %s193_s26, 640 }
  0x2a   : > { %p1311_p5 = scmp.ne.s32.totalorder %s193_s26, %s1310_s5  ;;  %s1414_s6 = smov [#allocation2]  }
  0x2b   : > { %s1315_s7 = sshll.u32 %s1414_s6, 4  ;;  %s1316_s7 = int_to_ptr.vmem [resolvable:$false] %s1315_s7 }
  0x2c   : > { %p1313_p7 = pnand %p1311_p5, %p1299_p2  ;;  %s1317_s9 = scalar_lea.vmem %s1316_s7, 1280 }
  0x2d   : > { %p1318_p4 = scmp.lt.s32.totalorder %s193_s26, %s1316_s7  ;;  %p1319_p9 = scmp.lt.s32.totalorder %s1317_s9, %s1310_s5 }
  0x2e   : > { %p1314_p6 = pneg %p1313_p7 }
  0x2f   : > { %p1320_p12 = por %p1319_p9, %p1318_p4 }
  0x31   : > { %p1321_p0 = pnand %p1320_p12, %p1314_p6 }
  0x33   : > { %1324 = shalt.err (!%p1321_p0)
}
  0x34   : > { %1209 = dma.hbm_to_vmem [thread:$0]  (!%p1533_p11), %s190_s30, 640, %s193_s26, %s181_s4  }
  0x35   : > { %201 = sbr.rel (%p1492_p8) target bundleno = 407 (0x197), region = 32  ;;  %s1547_s10 = sand.u32 (!%p1492_p8), 1, %s1393_s13  }
  0x36   : > { %s1191_s11 = smul.u32 (!%p1492_p8), 40, %s1547_s10  ;;  %s204_s19 = scalar_lea.sflag (!%p1492_p8), [#allocation3], %s1547_s10 }
  0x37   : > { %p1661_p3 = scmp.ne.s32.totalorder (!%p1492_p8), %s1655_s22, 0 }
  0x38   : > { %s1551_s25 = scalar_lea.vmem (!%p1492_p8), [#allocation2], %s1191_s11 }
  0x3a   : > { %1376 = dma.done.wait (%p1661_p3), %s204_s19, 640  }
  0x3b   : > { %1378 = vsyncadd (%p1661_p3), %s204_s19, 4294966656 }
  0x3c   : > { %1380 = dma.done.wait (%p1472_p1), [#allocation6], 30720  }
  0x3d   : > { %1382 = vsyncadd (%p1472_p1), [#allocation6], 4294936576  ;;  %v296_v0 = vld [vmem:[#allocation5 + $0x170] sm:$0xff]  ;;  %v295_v1 = vld [vmem:[#allocation5 + $0x168] sm:$0xff]  ;;  %vm1416_vm0 = vmmov 0   ;;  %s1192_s24 = smul.u32 24, %s1547_s10 }
  0x3e   : > { %v293_v2 = vld [vmem:[#allocation5 + $0x158] sm:$0xff]  ;;  %507 = vmatprep.subr.mxu0 %v296_v0  ;;  %v392_v3 = vld [vmem:[#allocation5 + $0x470] sm:$0xff]  ;;  %v391_v5 = vld [vmem:[#allocation5 + $0x468] sm:$0xff]  ;;  %s1193_s27 = smul.u32 384, %s1401_s15  ;;  %s934_s5 = scalar_lea.sflag [#allocation4], %s1547_s10 }
  0x3f   : > { %v292_v4 = vld [vmem:[#allocation5 + $0x150] sm:$0xff]  ;;  %508 = vmatpush1.msra.mxu0 %v295_v1  ;;  %578 = vmatprep.subr.mxu1 %v392_v3  ;;  %v290_v6 = vld [vmem:[#allocation5 + $0x140] sm:$0xff]  ;;  %v389_v7 = vld [vmem:[#allocation5 + $0x458] sm:$0xff]  ;;  %s237_s26 = scalar_lea.vmem [#allocation7], %s1192_s24  ;;  %s1417_s7 = smov [#allocation7]  }
  0x40   : > { %509 = vmatprep.subr.mxu0 %v293_v2  ;;  %579 = vmatpush1.msra.mxu1 %v391_v5  ;;  %v289_v8 = vld [vmem:[#allocation5 + $0x138] sm:$0xff]  ;;  %v388_v9 = vld [vmem:[#allocation5 + $0x450] sm:$0xff]  ;;  %v386_v10 = vld [vmem:[#allocation5 + $0x440] sm:$0xff]  ;;  %s950_s29 = sshll.u32 %s237_s26, 4  ;;  %s948_s4 = scalar_lea.hbm %s1651_s3, %s1193_s27  ;;  %s951_s29 = int_to_ptr.vmem [resolvable:$true] %s950_s29 }
  0x41   : > { %510 = vmatpush1.msra.mxu0 %v292_v4  ;;  %580 = vmatprep.subr.mxu1 %v389_v7  ;;  %v287_v11 = vld [vmem:[#allocation5 + $0x128] sm:$0xff]  ;;  %v385_v12 = vld [vmem:[#allocation5 + $0x438] sm:$0xff]  ;;  %v286_v13 = vld [vmem:[#allocation5 + $0x120] sm:$0xff]  ;;  %s1325_s6 = scalar_lea.vmem %s951_s29, 384  ;;  %s1329_s9 = sshll.u32 %s1417_s7, 4  ;;  %s1330_s9 = int_to_ptr.vmem [resolvable:$false] %s1329_s9 }
  0x42   : > { %511 = vmatprep.subr.mxu0 %v290_v6  ;;  %581 = vmatpush1.msra.mxu1 %v388_v9  ;;  %v383_v14 = vld [vmem:[#allocation5 + $0x428] sm:$0xff]  ;;  %v284_v15 = vld [vmem:[#allocation5 + $0x110] sm:$0xff]  ;;  %v382_v16 = vld [vmem:[#allocation5 + $0x420] sm:$0xff]  ;;  %p1326_p1 = scmp.ne.s32.totalorder %s951_s29, %s1325_s6  ;;  %s1331_s15 = scalar_lea.vmem %s1330_s9, 768 }
  0x43   : > { %512 = vmatpush1.msra.mxu0 %v289_v8  ;;  %582 = vmatprep.subr.mxu1 %v386_v10  ;;  %v283_v17 = vld [vmem:[#allocation5 + $0x108] sm:$0xff]  ;;  %v380_v18 = vld [vmem:[#allocation5 + $0x410] sm:$0xff]  ;;  %v281_v19 = vld [vmem:[#allocation5 + $0xf8] sm:$0xff]  ;;  %p1332_p2 = scmp.lt.s32.totalorder %s951_s29, %s1330_s9  ;;  %p1333_p5 = scmp.lt.s32.totalorder %s1331_s15, %s1325_s6 }
  0x44   : > { %513 = vmatprep.subr.mxu0 %v287_v11  ;;  %583 = vmatpush1.msra.mxu1 %v385_v12  ;;  %v379_v20 = vld [vmem:[#allocation5 + $0x408] sm:$0xff]  ;;  %v280_v21 = vld [vmem:[#allocation5 + $0xf0] sm:$0xff]  ;;  %v377_v22 = vld [vmem:[#allocation5 + $0x3f8] sm:$0xff]  ;;  %p1327_p8 = pnand %p1326_p1, %p1521_p13 }
  0x45   : > { %514 = vmatpush1.msra.mxu0 %v286_v13  ;;  %584 = vmatprep.subr.mxu1 %v383_v14  ;;  %v278_v23 = vld [vmem:[#allocation5 + $0xe0] sm:$0xff]  ;;  %v376_v24 = vld [vmem:[#allocation5 + $0x3f0] sm:$0xff]  ;;  %v277_v25 = vld [vmem:[#allocation5 + $0xd8] sm:$0xff]  ;;  %p1334_p7 = por %p1333_p5, %p1332_p2 }
  0x46   : > { %515 = vmatprep.subr.mxu0 %v284_v15  ;;  %585 = vmatpush1.msra.mxu1 %v382_v16  ;;  %v374_v26 = vld [vmem:[#allocation5 + $0x3e0] sm:$0xff]  ;;  %v275_v27 = vld [vmem:[#allocation5 + $0xc8] sm:$0xff]  ;;  %v373_v28 = vld [vmem:[#allocation5 + $0x3d8] sm:$0xff]  ;;  %p1328_p11 = pneg %p1327_p8 }
  0x47   : > { %516 = vmatpush1.msra.mxu0 %v283_v17  ;;  %586 = vmatprep.subr.mxu1 %v380_v18  ;;  %v274_v29 = vld [vmem:[#allocation5 + $0xc0] sm:$0xff]  ;;  %v371_v30 = vld [vmem:[#allocation5 + $0x3c8] sm:$0xff]  ;;  %v272_v31 = vld [vmem:[#allocation5 + $0xb0] sm:$0xff] }
  0x48   : > { %517 = vmatprep.subr.mxu0 %v281_v19  ;;  %587 = vmatpush1.msra.mxu1 %v379_v20  ;;  %v370_v32 = vld [vmem:[#allocation5 + $0x3c0] sm:$0xff]  ;;  %v271_v33 = vld [vmem:[#allocation5 + $0xa8] sm:$0xff]  ;;  %v368_v34 = vld [vmem:[#allocation5 + $0x3b0] sm:$0xff]  ;;  %p1335_p6 = pnand %p1334_p7, %p1328_p11 }
  0x49   : > { %518 = vmatpush1.msra.mxu0 %v280_v21  ;;  %588 = vmatprep.subr.mxu1 %v377_v22  ;;  %v269_v35 = vld [vmem:[#allocation5 + $0x98] sm:$0xff]  ;;  %v367_v36 = vld [vmem:[#allocation5 + $0x3a8] sm:$0xff]  ;;  %v268_v37 = vld [vmem:[#allocation5 + $0x90] sm:$0xff] }
  0x4a   : > { %519 = vmatprep.subr.mxu0 %v278_v23  ;;  %589 = vmatpush1.msra.mxu1 %v376_v24  ;;  %v365_v38 = vld [vmem:[#allocation5 + $0x398] sm:$0xff]  ;;  %v266_v39 = vld [vmem:[#allocation5 + $0x80] sm:$0xff]  ;;  %v364_v40 = vld [vmem:[#allocation5 + $0x390] sm:$0xff] }
  0x4b   : > { %520 = vmatpush1.msra.mxu0 %v277_v25  ;;  %590 = vmatprep.subr.mxu1 %v374_v26  ;;  %v265_v41 = vld [vmem:[#allocation5 + $0x78] sm:$0xff]  ;;  %v362_v42 = vld [vmem:[#allocation5 + $0x380] sm:$0xff]  ;;  %v263_v43 = vld [vmem:[#allocation5 + $0x68] sm:$0xff] }
  0x4c   : > { %521 = vmatprep.subr.mxu0 %v275_v27  ;;  %591 = vmatpush1.msra.mxu1 %v373_v28  ;;  %v361_v44 = vld [vmem:[#allocation5 + $0x378] sm:$0xff]  ;;  %v262_v45 = vld [vmem:[#allocation5 + $0x60] sm:$0xff]  ;;  %v359_v46 = vld [vmem:[#allocation5 + $0x368] sm:$0xff] }
  0x4d   : > { %522 = vmatpush1.msra.mxu0 %v274_v29  ;;  %592 = vmatprep.subr.mxu1 %v371_v30  ;;  %v260_v47 = vld [vmem:[#allocation5 + $0x50] sm:$0xff]  ;;  %v358_v48 = vld [vmem:[#allocation5 + $0x360] sm:$0xff]  ;;  %v259_v49 = vld [vmem:[#allocation5 + $0x48] sm:$0xff] }
  0x4e   : > { %523 = vmatprep.subr.mxu0 %v272_v31  ;;  %593 = vmatpush1.msra.mxu1 %v370_v32  ;;  %v356_v50 = vld [vmem:[#allocation5 + $0x350] sm:$0xff]  ;;  %v257_v51 = vld [vmem:[#allocation5 + $0x38] sm:$0xff]  ;;  %v355_v52 = vld [vmem:[#allocation5 + $0x348] sm:$0xff] }
  0x4f   : > { %524 = vmatpush1.msra.mxu0 %v271_v33  ;;  %594 = vmatprep.subr.mxu1 %v368_v34  ;;  %v256_v53 = vld [vmem:[#allocation5 + $0x30] sm:$0xff]  ;;  %v353_v54 = vld [vmem:[#allocation5 + $0x338] sm:$0xff]  ;;  %v254_v55 = vld [vmem:[#allocation5 + $0x20] sm:$0xff] }
  0x50   : > { %525 = vmatprep.subr.mxu0 %v269_v35  ;;  %595 = vmatpush1.msra.mxu1 %v367_v36  ;;  %v352_v56 = vld [vmem:[#allocation5 + $0x330] sm:$0xff]  ;;  %v253_v57 = vld [vmem:[#allocation5 + $0x18] sm:$0xff]  ;;  %v350_v58 = vld [vmem:[#allocation5 + $0x320] sm:$0xff] }
  0x51   : > { %526 = vmatpush1.msra.mxu0 %v268_v37  ;;  %596 = vmatprep.subr.mxu1 %v365_v38  ;;  %v251_v59 = vld [vmem:[#allocation5 + $0x8] sm:$0xff]  ;;  %v349_v60 = vld [vmem:[#allocation5 + $0x318] sm:$0xff]  ;;  %v250_v61 = vld [vmem:[#allocation5] sm:$0xff] }
  0x52   : > { %527 = vmatprep.subr.mxu0 %v266_v39  ;;  %597 = vmatpush1.msra.mxu1 %v364_v40  ;;  %v347_v62 = vld [vmem:[#allocation5 + $0x308] sm:$0xff]  ;;  %v344_v63 = vld [vmem:[#allocation5 + $0x2f0] sm:$0xff]  ;;  %v346_v0 = vld [vmem:[#allocation5 + $0x300] sm:$0xff] }
  0x53   : > { %528 = vmatpush1.msra.mxu0 %v265_v41  ;;  %598 = vmatprep.subr.mxu1 %v362_v42  ;;  %v343_v1 = vld [vmem:[#allocation5 + $0x2e8] sm:$0xff]  ;;  %v440_v2 = vld [vmem:[#allocation5 + $0x5f0] sm:$0xff]  ;;  %v341_v3 = vld [vmem:[#allocation5 + $0x2d8] sm:$0xff] }
  0x54   : > { %529 = vmatprep.subr.mxu0 %v263_v43  ;;  %599 = vmatpush1.msra.mxu1 %v361_v44  ;;  %v439_v4 = vld [vmem:[#allocation5 + $0x5e8] sm:$0xff]  ;;  %v340_v5 = vld [vmem:[#allocation5 + $0x2d0] sm:$0xff]  ;;  %v437_v6 = vld [vmem:[#allocation5 + $0x5d8] sm:$0xff] }
  0x55   : > { %530 = vmatpush1.msra.mxu0 %v262_v45  ;;  %600 = vmatprep.subr.mxu1 %v359_v46  ;;  %v338_v7 = vld [vmem:[#allocation5 + $0x2c0] sm:$0xff]  ;;  %v436_v8 = vld [vmem:[#allocation5 + $0x5d0] sm:$0xff]  ;;  %v337_v9 = vld [vmem:[#allocation5 + $0x2b8] sm:$0xff] }
  0x56   : > { %531 = vmatprep.subr.mxu0 %v260_v47  ;;  %601 = vmatpush1.msra.mxu1 %v358_v48  ;;  %v434_v10 = vld [vmem:[#allocation5 + $0x5c0] sm:$0xff]  ;;  %v335_v11 = vld [vmem:[#allocation5 + $0x2a8] sm:$0xff]  ;;  %v433_v12 = vld [vmem:[#allocation5 + $0x5b8] sm:$0xff] }
  0x57   : > { %532 = vmatpush1.msra.mxu0 %v259_v49  ;;  %602 = vmatprep.subr.mxu1 %v356_v50  ;;  %v334_v13 = vld [vmem:[#allocation5 + $0x2a0] sm:$0xff]  ;;  %v431_v14 = vld [vmem:[#allocation5 + $0x5a8] sm:$0xff]  ;;  %v332_v15 = vld [vmem:[#allocation5 + $0x290] sm:$0xff] }
  0x58   : > { %533 = vmatprep.subr.mxu0 %v257_v51  ;;  %603 = vmatpush1.msra.mxu1 %v355_v52  ;;  %v430_v16 = vld [vmem:[#allocation5 + $0x5a0] sm:$0xff]  ;;  %v331_v17 = vld [vmem:[#allocation5 + $0x288] sm:$0xff]  ;;  %v428_v18 = vld [vmem:[#allocation5 + $0x590] sm:$0xff] }
  0x59   : > { %534 = vmatpush1.msra.mxu0 %v256_v53  ;;  %604 = vmatprep.subr.mxu1 %v353_v54  ;;  %v329_v19 = vld [vmem:[#allocation5 + $0x278] sm:$0xff]  ;;  %v427_v20 = vld [vmem:[#allocation5 + $0x588] sm:$0xff]  ;;  %v328_v21 = vld [vmem:[#allocation5 + $0x270] sm:$0xff] }
  0x5a   : > { %535 = vmatprep.subr.mxu0 %v254_v55  ;;  %605 = vmatpush1.msra.mxu1 %v352_v56  ;;  %v425_v22 = vld [vmem:[#allocation5 + $0x578] sm:$0xff]  ;;  %v326_v23 = vld [vmem:[#allocation5 + $0x260] sm:$0xff]  ;;  %v424_v24 = vld [vmem:[#allocation5 + $0x570] sm:$0xff] }
  0x5b   : > { %536 = vmatpush1.msra.mxu0 %v253_v57  ;;  %606 = vmatprep.subr.mxu1 %v350_v58  ;;  %v325_v25 = vld [vmem:[#allocation5 + $0x258] sm:$0xff]  ;;  %v422_v26 = vld [vmem:[#allocation5 + $0x560] sm:$0xff]  ;;  %v323_v27 = vld [vmem:[#allocation5 + $0x248] sm:$0xff] }
  0x5c   : > { %537 = vmatprep.subr.mxu0 %v251_v59  ;;  %607 = vmatpush1.msra.mxu1 %v349_v60  ;;  %v421_v28 = vld [vmem:[#allocation5 + $0x558] sm:$0xff]  ;;  %v322_v29 = vld [vmem:[#allocation5 + $0x240] sm:$0xff]  ;;  %v419_v30 = vld [vmem:[#allocation5 + $0x548] sm:$0xff] }
  0x5d   : > { %538 = vmatpush1.msra.mxu0 %v250_v61  ;;  %608 = vmatprep.subr.mxu1 %v347_v62  ;;  %v320_v31 = vld [vmem:[#allocation5 + $0x230] sm:$0xff]  ;;  %v418_v32 = vld [vmem:[#allocation5 + $0x540] sm:$0xff]  ;;  %v319_v33 = vld [vmem:[#allocation5 + $0x228] sm:$0xff] }
  0x5e   : > { %539 = vmatprep.subr.mxu0 %v344_v63  ;;  %609 = vmatpush1.msra.mxu1 %v346_v0  ;;  %v416_v34 = vld [vmem:[#allocation5 + $0x530] sm:$0xff]  ;;  %v317_v35 = vld [vmem:[#allocation5 + $0x218] sm:$0xff]  ;;  %v415_v36 = vld [vmem:[#allocation5 + $0x528] sm:$0xff] }
  0x5f   : > { %540 = vmatpush2.msra.mxu0 %v343_v1  ;;  %610 = vmatprep.subr.mxu1 %v440_v2  ;;  %v316_v37 = vld [vmem:[#allocation5 + $0x210] sm:$0xff]  ;;  %v413_v38 = vld [vmem:[#allocation5 + $0x518] sm:$0xff]  ;;  %v314_v39 = vld [vmem:[#allocation5 + $0x200] sm:$0xff] }
  0x60   : > { %541 = vmatprep.subr.mxu0 %v341_v3  ;;  %611 = vmatpush2.msra.mxu1 %v439_v4  ;;  %v412_v40 = vld [vmem:[#allocation5 + $0x510] sm:$0xff]  ;;  %v313_v41 = vld [vmem:[#allocation5 + $0x1f8] sm:$0xff]  ;;  %v410_v42 = vld [vmem:[#allocation5 + $0x500] sm:$0xff] }
  0x61   : > { %542 = vmatpush2.msra.mxu0 %v340_v5  ;;  %612 = vmatprep.subr.mxu1 %v437_v6  ;;  %v311_v43 = vld [vmem:[#allocation5 + $0x1e8] sm:$0xff]  ;;  %v409_v44 = vld [vmem:[#allocation5 + $0x4f8] sm:$0xff]  ;;  %v310_v45 = vld [vmem:[#allocation5 + $0x1e0] sm:$0xff] }
  0x62   : > { %543 = vmatprep.subr.mxu0 %v338_v7  ;;  %613 = vmatpush2.msra.mxu1 %v436_v8  ;;  %v407_v46 = vld [vmem:[#allocation5 + $0x4e8] sm:$0xff]  ;;  %v308_v47 = vld [vmem:[#allocation5 + $0x1d0] sm:$0xff]  ;;  %v406_v48 = vld [vmem:[#allocation5 + $0x4e0] sm:$0xff] }
  0x63   : > { %544 = vmatpush2.msra.mxu0 %v337_v9  ;;  %614 = vmatprep.subr.mxu1 %v434_v10  ;;  %v307_v49 = vld [vmem:[#allocation5 + $0x1c8] sm:$0xff]  ;;  %v404_v50 = vld [vmem:[#allocation5 + $0x4d0] sm:$0xff]  ;;  %v305_v51 = vld [vmem:[#allocation5 + $0x1b8] sm:$0xff] }
  0x64   : > { %545 = vmatprep.subr.mxu0 %v335_v11  ;;  %615 = vmatpush2.msra.mxu1 %v433_v12  ;;  %v403_v52 = vld [vmem:[#allocation5 + $0x4c8] sm:$0xff]  ;;  %v304_v53 = vld [vmem:[#allocation5 + $0x1b0] sm:$0xff]  ;;  %v401_v54 = vld [vmem:[#allocation5 + $0x4b8] sm:$0xff] }
  0x65   : > { %546 = vmatpush2.msra.mxu0 %v334_v13  ;;  %616 = vmatprep.subr.mxu1 %v431_v14  ;;  %v302_v55 = vld [vmem:[#allocation5 + $0x1a0] sm:$0xff]  ;;  %v400_v56 = vld [vmem:[#allocation5 + $0x4b0] sm:$0xff]  ;;  %v301_v57 = vld [vmem:[#allocation5 + $0x198] sm:$0xff] }
  0x66   : > { %547 = vmatprep.subr.mxu0 %v332_v15  ;;  %617 = vmatpush2.msra.mxu1 %v430_v16  ;;  %v398_v58 = vld [vmem:[#allocation5 + $0x4a0] sm:$0xff]  ;;  %v299_v59 = vld [vmem:[#allocation5 + $0x188] sm:$0xff]  ;;  %v397_v62 = vld [vmem:[#allocation5 + $0x498] sm:$0xff] }
  0x67   : > { %548 = vmatpush2.msra.mxu0 %v331_v17  ;;  %618 = vmatprep.subr.mxu1 %v428_v18  ;;  %v1562_v60 = vld [vmem:[%s1551_s25 + $0x8] sm:$0xff]  ;;  %v1565_v63 = vld [vmem:[%s1551_s25] sm:$0xff]  ;;  %v395_v0 = vld [vmem:[#allocation5 + $0x488] sm:$0xff] }
  0x68   : > { %549 = vmatprep.subr.mxu0 %v329_v19  ;;  %619 = vmatpush2.msra.mxu1 %v427_v20  ;;  %v298_v61 = vld [vmem:[#allocation5 + $0x180] sm:$0xff]  ;;  %v488_v1 = vld [vmem:[#allocation5 + $0x770] sm:$0xff]  ;;  %v487_v4 = vld [vmem:[#allocation5 + $0x768] sm:$0xff] }
  0x69   : > { %550 = vmatpush2.msra.mxu0 %v328_v21  ;;  %620 = vmatprep.subr.mxu1 %v425_v22  ;;  %v394_v2 = vld [vmem:[#allocation5 + $0x480] sm:$0xff]  ;;  %v1569_v3 = vld [vmem:[%s1551_s25 + $0x18] sm:$0xff]  ;;  %v485_v6 = vld [vmem:[#allocation5 + $0x758] sm:$0xff] }
  0x6a   : > { %551 = vmatprep.subr.mxu0 %v326_v23  ;;  %621 = vmatpush2.msra.mxu1 %v424_v24  ;;  %v1573_v5 = vld [vmem:[%s1551_s25 + $0x10] sm:$0xff]  ;;  %v484_v7 = vld [vmem:[#allocation5 + $0x750] sm:$0xff]  ;;  %v345_v8 = vld [vmem:[#allocation5 + $0x2f8] sm:$0xff] }
  0x6b   : > { %552 = vmatpush2.msra.mxu0 %v325_v25  ;;  %622 = vmatprep.subr.mxu1 %v422_v26  ;;  %v482_v9 = vld [vmem:[#allocation5 + $0x740] sm:$0xff]  ;;  %v297_v10 = vld [vmem:[#allocation5 + $0x178] sm:$0xff]  ;;  %v479_v13 = vld [vmem:[#allocation5 + $0x728] sm:$0xff] }
  0x6c   : > { %553 = vmatprep.subr.mxu0 %v323_v27  ;;  %623 = vmatpush2.msra.mxu1 %v421_v28  ;;  %v481_v11 = vld [vmem:[#allocation5 + $0x738] sm:$0xff]  ;;  %v342_v12 = vld [vmem:[#allocation5 + $0x2e0] sm:$0xff]  ;;  %v339_v16 = vld [vmem:[#allocation5 + $0x2c8] sm:$0xff] }
  0x6d   : > { %554 = vmatpush2.msra.mxu0 %v322_v29  ;;  %624 = vmatprep.subr.mxu1 %v419_v30  ;;  %v294_v14 = vld [vmem:[#allocation5 + $0x160] sm:$0xff]  ;;  %v476_v17 = vld [vmem:[#allocation5 + $0x710] sm:$0xff]  ;;  %v291_v18 = vld [vmem:[#allocation5 + $0x148] sm:$0xff] }
  0x6e   : > { %555 = vmatprep.subr.mxu0 %v320_v31  ;;  %625 = vmatpush2.msra.mxu1 %v418_v32  ;;  %v478_v15 = vld [vmem:[#allocation5 + $0x720] sm:$0xff]  ;;  %v475_v19 = vld [vmem:[#allocation5 + $0x708] sm:$0xff]  ;;  %v336_v20 = vld [vmem:[#allocation5 + $0x2b0] sm:$0xff] }
  0x6f   : > { %556 = vmatpush2.msra.mxu0 %v319_v33  ;;  %626 = vmatprep.subr.mxu1 %v416_v34  ;;  %v473_v21 = vld [vmem:[#allocation5 + $0x6f8] sm:$0xff]  ;;  %v288_v22 = vld [vmem:[#allocation5 + $0x130] sm:$0xff]  ;;  %v470_v25 = vld [vmem:[#allocation5 + $0x6e0] sm:$0xff] }
  0x70   : > { %557 = vmatprep.subr.mxu0 %v317_v35  ;;  %627 = vmatpush2.msra.mxu1 %v415_v36  ;;  %v472_v23 = vld [vmem:[#allocation5 + $0x6f0] sm:$0xff]  ;;  %v333_v24 = vld [vmem:[#allocation5 + $0x298] sm:$0xff]  ;;  %v330_v28 = vld [vmem:[#allocation5 + $0x280] sm:$0xff] }
  0x71   : > { %558 = vmatpush2.msra.mxu0 %v316_v37  ;;  %628 = vmatprep.subr.mxu1 %v413_v38  ;;  %v285_v26 = vld [vmem:[#allocation5 + $0x118] sm:$0xff]  ;;  %v467_v29 = vld [vmem:[#allocation5 + $0x6c8] sm:$0xff]  ;;  %v282_v30 = vld [vmem:[#allocation5 + $0x100] sm:$0xff] }
  0x72   : > { %559 = vmatprep.subr.mxu0 %v314_v39  ;;  %629 = vmatpush2.msra.mxu1 %v412_v40  ;;  %v469_v27 = vld [vmem:[#allocation5 + $0x6d8] sm:$0xff]  ;;  %v466_v31 = vld [vmem:[#allocation5 + $0x6c0] sm:$0xff]  ;;  %v327_v32 = vld [vmem:[#allocation5 + $0x268] sm:$0xff] }
  0x73   : > { %560 = vmatpush2.msra.mxu0 %v313_v41  ;;  %630 = vmatprep.subr.mxu1 %v410_v42  ;;  %v464_v33 = vld [vmem:[#allocation5 + $0x6b0] sm:$0xff]  ;;  %v279_v34 = vld [vmem:[#allocation5 + $0xe8] sm:$0xff]  ;;  %v461_v37 = vld [vmem:[#allocation5 + $0x698] sm:$0xff] }
  0x74   : > { %561 = vmatprep.subr.mxu0 %v311_v43  ;;  %631 = vmatpush2.msra.mxu1 %v409_v44  ;;  %v463_v35 = vld [vmem:[#allocation5 + $0x6a8] sm:$0xff]  ;;  %v324_v36 = vld [vmem:[#allocation5 + $0x250] sm:$0xff]  ;;  %v321_v40 = vld [vmem:[#allocation5 + $0x238] sm:$0xff] }
  0x75   : > { %562 = vmatpush2.msra.mxu0 %v310_v45  ;;  %632 = vmatprep.subr.mxu1 %v407_v46  ;;  %v276_v38 = vld [vmem:[#allocation5 + $0xd0] sm:$0xff]  ;;  %v458_v41 = vld [vmem:[#allocation5 + $0x680] sm:$0xff]  ;;  %v273_v42 = vld [vmem:[#allocation5 + $0xb8] sm:$0xff] }
  0x76   : > { %563 = vmatprep.subr.mxu0 %v308_v47  ;;  %633 = vmatpush2.msra.mxu1 %v406_v48  ;;  %v460_v39 = vld [vmem:[#allocation5 + $0x690] sm:$0xff]  ;;  %v457_v43 = vld [vmem:[#allocation5 + $0x678] sm:$0xff]  ;;  %v318_v44 = vld [vmem:[#allocation5 + $0x220] sm:$0xff] }
  0x77   : > { %564 = vmatpush2.msra.mxu0 %v307_v49  ;;  %634 = vmatprep.subr.mxu1 %v404_v50  ;;  %v455_v45 = vld [vmem:[#allocation5 + $0x668] sm:$0xff]  ;;  %v270_v46 = vld [vmem:[#allocation5 + $0xa0] sm:$0xff]  ;;  %v452_v49 = vld [vmem:[#allocation5 + $0x650] sm:$0xff] }
  0x78   : > { %565 = vmatprep.subr.mxu0 %v305_v51  ;;  %635 = vmatpush2.msra.mxu1 %v403_v52  ;;  %v454_v47 = vld [vmem:[#allocation5 + $0x660] sm:$0xff]  ;;  %v315_v48 = vld [vmem:[#allocation5 + $0x208] sm:$0xff]  ;;  %v312_v52 = vld [vmem:[#allocation5 + $0x1f0] sm:$0xff] }
  0x79   : > { %566 = vmatpush2.msra.mxu0 %v304_v53  ;;  %636 = vmatprep.subr.mxu1 %v401_v54  ;;  %v267_v50 = vld [vmem:[#allocation5 + $0x88] sm:$0xff]  ;;  %v449_v53 = vld [vmem:[#allocation5 + $0x638] sm:$0xff]  ;;  %v264_v54 = vld [vmem:[#allocation5 + $0x70] sm:$0xff] }
  0x7a   : > { %567 = vmatprep.subr.mxu0 %v302_v55  ;;  %637 = vmatpush2.msra.mxu1 %v400_v56  ;;  %v451_v51 = vld [vmem:[#allocation5 + $0x648] sm:$0xff]  ;;  %v448_v55 = vld [vmem:[#allocation5 + $0x630] sm:$0xff]  ;;  %v309_v56 = vld [vmem:[#allocation5 + $0x1d8] sm:$0xff] }
  0x7b   : > { %568 = vmatpush2.msra.mxu0 %v301_v57  ;;  %638 = vmatprep.subr.mxu1 %v398_v58  ;;  %v446_v57 = vld [vmem:[#allocation5 + $0x620] sm:$0xff]  ;;  %v261_v58 = vld [vmem:[#allocation5 + $0x58] sm:$0xff] }
  0x7c   : > { %569 = vmatprep.subr.mxu0 %v299_v59  ;;  %571 = vmatprep.mubr.f32.mxu0 %v1562_v60  ;;  %v445_v59 = vld [vmem:[#allocation5 + $0x618] sm:$0xff] }
  0x7d   : > { %570 = vmatpush2.msra.mxu0 %v298_v61  ;;  %639 = vmatpush2.msra.mxu1 %v397_v62  ;;  %v306_v61 = vld [vmem:[#allocation5 + $0x1c0] sm:$0xff]  ;;  %v443_v62 = vld [vmem:[#allocation5 + $0x608] sm:$0xff] }
  0x7e   : > { %572 = vmatmul.mubr.f32.vlgmr.msra.gmra.mxu0 %v1565_v63  ;;  %640 = vmatprep.subr.mxu1 %v395_v0  ;;  %v442_v0 = vld [vmem:[#allocation5 + $0x600] sm:$0xff] }
  0x7f   : > { %649 = vmatprep.subr.mxu0 %v488_v1  ;;  %641 = vmatpush2.msra.mxu1 %v394_v2  ;;  %v258_v1 = vld [vmem:[#allocation5 + $0x40] sm:$0xff]  ;;  %v1578_v2 = vld [vmem:[%s1551_s25 + $0x20] sm:$0xff] }
  0x80   : > { %642 = vmatprep.mubr.f32.mxu1 %v1569_v3  ;;  %650 = vmatpush1.msra.mxu0 %v487_v4  ;;  %v303_v4 = vld [vmem:[#allocation5 + $0x1a8] sm:$0xff] }
  0x81   : > { %643 = vmatmul.mubr.f32.vlgmr.msra.gmra.mxu1 %v1573_v5  ;;  %651 = vmatprep.subr.mxu0 %v485_v6  ;;  %v1415_v6 = vmov 0.0  }
  0x82   : > { %652 = vmatpush1.msra.mxu0 %v484_v7  ;;  %1067 = vmatprep.subr.mxu1 %v345_v8  ;;  %v441_v7 = vld [vmem:[#allocation5 + $0x5f8] sm:$0xff]  ;;  %v255_v8 = vld [vmem:[#allocation5 + $0x28] sm:$0xff] }
  0x83   : > { %653 = vmatprep.subr.mxu0 %v482_v9  ;;  %1068 = vmatpush3.msra.mxu1 %v297_v10  ;;  %v393_v9 = vld [vmem:[#allocation5 + $0x478] sm:$0xff]  ;;  %v300_v10 = vld [vmem:[#allocation5 + $0x190] sm:$0xff] }
  0x84   : > { %654 = vmatpush1.msra.mxu0 %v481_v11  ;;  %1069 = vmatprep.subr.mxu1 %v342_v12  ;;  %v438_v11 = vld [vmem:[#allocation5 + $0x5e0] sm:$0xff]  ;;  %v252_v12 = vld [vmem:[#allocation5 + $0x10] sm:$0xff] }
  0x85   : > { %655 = vmatprep.subr.mxu0 %v479_v13  ;;  %1070 = vmatpush3.msra.mxu1 %v294_v14  ;;  %v390_v13 = vld [vmem:[#allocation5 + $0x460] sm:$0xff]  ;;  %v435_v14 = vld [vmem:[#allocation5 + $0x5c8] sm:$0xff] }
  0x86   : > { %656 = vmatpush1.msra.mxu0 %v478_v15  ;;  %1071 = vmatprep.subr.mxu1 %v339_v16  ;;  %v387_v15 = vld [vmem:[#allocation5 + $0x448] sm:$0xff]  ;;  %v489_v16 = vld [vmem:[#allocation5 + $0x778] sm:$0xff] }
  0x87   : > { %657 = vmatprep.subr.mxu0 %v476_v17  ;;  %1072 = vmatpush3.msra.mxu1 %v291_v18  ;;  %v432_v17 = vld [vmem:[#allocation5 + $0x5b0] sm:$0xff] }
  0x88   : > { %658 = vmatpush1.msra.mxu0 %v475_v19  ;;  %1073 = vmatprep.subr.mxu1 %v336_v20  ;;  %v384_v18 = vld [vmem:[#allocation5 + $0x430] sm:$0xff]  ;;  %v486_v19 = vld [vmem:[#allocation5 + $0x760] sm:$0xff]  ;;  %v429_v20 = vld [vmem:[#allocation5 + $0x598] sm:$0xff] }
  0x89   : > { %659 = vmatprep.subr.mxu0 %v473_v21  ;;  %1074 = vmatpush3.msra.mxu1 %v288_v22  ;;  %v381_v21 = vld [vmem:[#allocation5 + $0x418] sm:$0xff]  ;;  %v483_v22 = vld [vmem:[#allocation5 + $0x748] sm:$0xff] }
  0x8a   : > { %660 = vmatpush1.msra.mxu0 %v472_v23  ;;  %1075 = vmatprep.subr.mxu1 %v333_v24  ;;  %v426_v23 = vld [vmem:[#allocation5 + $0x580] sm:$0xff]  ;;  %v480_v24 = vld [vmem:[#allocation5 + $0x730] sm:$0xff] }
  0x8b   : > { %661 = vmatprep.subr.mxu0 %v470_v25  ;;  %1076 = vmatpush3.msra.mxu1 %v285_v26  ;;  %v423_v25 = vld [vmem:[#allocation5 + $0x568] sm:$0xff]  ;;  %v477_v26 = vld [vmem:[#allocation5 + $0x718] sm:$0xff] }
  0x8c   : > { %662 = vmatpush1.msra.mxu0 %v469_v27  ;;  %1077 = vmatprep.subr.mxu1 %v330_v28  ;;  %v420_v27 = vld [vmem:[#allocation5 + $0x550] sm:$0xff] }
  0x8d   : > { %663 = vmatprep.subr.mxu0 %v467_v29  ;;  %1078 = vmatpush3.msra.mxu1 %v282_v30  ;;  %v372_v28 = vld [vmem:[#allocation5 + $0x3d0] sm:$0xff]  ;;  %v474_v29 = vld [vmem:[#allocation5 + $0x700] sm:$0xff]  ;;  %v417_v30 = vld [vmem:[#allocation5 + $0x538] sm:$0xff] }
  0x8e   : > { %664 = vmatpush1.msra.mxu0 %v466_v31  ;;  %1079 = vmatprep.subr.mxu1 %v327_v32  ;;  %v369_v31 = vld [vmem:[#allocation5 + $0x3b8] sm:$0xff]  ;;  %v471_v32 = vld [vmem:[#allocation5 + $0x6e8] sm:$0xff] }
  0x8f   : > { %665 = vmatprep.subr.mxu0 %v464_v33  ;;  %1080 = vmatpush3.msra.mxu1 %v279_v34  ;;  %v414_v33 = vld [vmem:[#allocation5 + $0x520] sm:$0xff] }
  0x90   : > { %666 = vmatpush1.msra.mxu0 %v463_v35  ;;  %1081 = vmatprep.subr.mxu1 %v324_v36  ;;  %v366_v34 = vld [vmem:[#allocation5 + $0x3a0] sm:$0xff]  ;;  %v468_v35 = vld [vmem:[#allocation5 + $0x6d0] sm:$0xff]  ;;  %v411_v36 = vld [vmem:[#allocation5 + $0x508] sm:$0xff] }
  0x91   : > { %667 = vmatprep.subr.mxu0 %v461_v37  ;;  %1082 = vmatpush3.msra.mxu1 %v276_v38  ;;  %v363_v37 = vld [vmem:[#allocation5 + $0x388] sm:$0xff]  ;;  %v465_v38 = vld [vmem:[#allocation5 + $0x6b8] sm:$0xff] }
  0x92   : > { %668 = vmatpush1.msra.mxu0 %v460_v39  ;;  %1083 = vmatprep.subr.mxu1 %v321_v40  ;;  %v408_v39 = vld [vmem:[#allocation5 + $0x4f0] sm:$0xff] }
  0x93   : > { %669 = vmatprep.subr.mxu0 %v458_v41  ;;  %1084 = vmatpush3.msra.mxu1 %v273_v42  ;;  %v360_v40 = vld [vmem:[#allocation5 + $0x370] sm:$0xff]  ;;  %v462_v41 = vld [vmem:[#allocation5 + $0x6a0] sm:$0xff]  ;;  %v405_v42 = vld [vmem:[#allocation5 + $0x4d8] sm:$0xff] }
  0x94   : > { %670 = vmatpush1.msra.mxu0 %v457_v43  ;;  %1085 = vmatprep.subr.mxu1 %v318_v44  ;;  %v357_v43 = vld [vmem:[#allocation5 + $0x358] sm:$0xff]  ;;  %v459_v44 = vld [vmem:[#allocation5 + $0x688] sm:$0xff] }
  0x95   : > { %671 = vmatprep.subr.mxu0 %v455_v45  ;;  %1086 = vmatpush3.msra.mxu1 %v270_v46  ;;  %v402_v45 = vld [vmem:[#allocation5 + $0x4c0] sm:$0xff] }
  0x96   : > { %672 = vmatpush1.msra.mxu0 %v454_v47  ;;  %1087 = vmatprep.subr.mxu1 %v315_v48  ;;  %v354_v46 = vld [vmem:[#allocation5 + $0x340] sm:$0xff]  ;;  %v456_v47 = vld [vmem:[#allocation5 + $0x670] sm:$0xff]  ;;  %v399_v48 = vld [vmem:[#allocation5 + $0x4a8] sm:$0xff] }
  0x97   : > { %673 = vmatprep.subr.mxu0 %v452_v49  ;;  %1088 = vmatpush3.msra.mxu1 %v267_v50  ;;  %v351_v49 = vld [vmem:[#allocation5 + $0x328] sm:$0xff]  ;;  %v453_v50 = vld [vmem:[#allocation5 + $0x658] sm:$0xff] }
  0x98   : > { %674 = vmatpush1.msra.mxu0 %v451_v51  ;;  %1089 = vmatprep.subr.mxu1 %v312_v52  ;;  %v396_v51 = vld [vmem:[#allocation5 + $0x490] sm:$0xff] }
  0x99   : > { %675 = vmatprep.subr.mxu0 %v449_v53  ;;  %1090 = vmatpush3.msra.mxu1 %v264_v54  ;;  %v348_v52 = vld [vmem:[#allocation5 + $0x310] sm:$0xff]  ;;  %v450_v53 = vld [vmem:[#allocation5 + $0x640] sm:$0xff]  ;;  %v447_v54 = vld [vmem:[#allocation5 + $0x628] sm:$0xff] }
  0x9a   : > { %676 = vmatpush1.msra.mxu0 %v448_v55  ;;  %1091 = vmatprep.subr.mxu1 %v309_v56  ;;  %v444_v55 = vld [vmem:[#allocation5 + $0x610] sm:$0xff]  ;;  %v492_v56 = vlaneseq }
  0x9b   : > { %677 = vmatprep.subr.mxu0 %v446_v57  ;;  %1092 = vmatpush3.msra.mxu1 %v261_v58 }
  0x9c   : > { %678 = vmatpush1.msra.mxu0 %v445_v59  ;;  %1093 = vmatprep.subr.mxu1 %v306_v61  ;;  %v493_v57 = vshrl.u32 %v492_v56, 7 }
  0x9d   : > { %679 = vmatprep.subr.mxu0 %v443_v62  ;;  %713 = vmatprep.mubr.f32.mxu0 %v1415_v6 }
  0x9e   : > { %680 = vmatpush1.msra.mxu0 %v442_v0  ;;  %1094 = vmatpush3.msra.mxu1 %v258_v1  ;;  %v494_v58 = vsub.s32 0, %v493_v57 }
  0x9f   : > { %714 = vmatmul.mubr.f32.vlgmr.msra.gmra.mxu0 %v1578_v2  ;;  %1095 = vmatprep.subr.mxu1 %v303_v4 }
  0xa0   : > { %1102 = vmatprep.subr.mxu0 %v441_v7  ;;  %1096 = vmatpush3.msra.mxu1 %v255_v8 }
  0xa1   : > { %1103 = vmatpush3.msra.mxu0 %v393_v9  ;;  %1097 = vmatprep.subr.mxu1 %v300_v10 }
  0xa2   : > { %1104 = vmatprep.subr.mxu0 %v438_v11  ;;  %1098 = vmatpush3.msra.mxu1 %v252_v12 }
  0xa3   : > { %1105 = vmatpush3.msra.mxu0 %v390_v13  ;;  %784 = vmatprep.mubr.f32.mxu1 %v1562_v60  ;;  %v378_v60 = vld [vmem:[#allocation5 + $0x400] sm:$0xff] }
  0xa4   : > { %1106 = vmatprep.subr.mxu0 %v435_v14  ;;  %1154 = vmatprep.subr.mxu1 %v1415_v6  ;;  %v502_v14 = vsub.s32 2, %v493_v57 }
  0xa5   : > { %785 = vmatmul.mubr.f32.vlgmr.msra.gmra.mxu1 %v1565_v63  ;;  %1107 = vmatpush3.msra.mxu0 %v387_v15  ;;  %v375_v63 = vld [vmem:[#allocation5 + $0x3e8] sm:$0xff] }
  0xa6   : > { %1155 = vmatpush3.msra.mxu1 %v489_v16  ;;  %1108 = vmatprep.subr.mxu0 %v432_v17 }
  0xa7   : > { %1156 = vmatprep.subr.mxu1 %v1415_v6  ;;  %1109 = vmatpush3.msra.mxu0 %v384_v18 }
  0xa8   : > { %1157 = vmatpush3.msra.mxu1 %v486_v19  ;;  %1110 = vmatprep.subr.mxu0 %v429_v20 }
  0xa9   : > { %1158 = vmatprep.subr.mxu1 %v1415_v6  ;;  %1111 = vmatpush3.msra.mxu0 %v381_v21 }
  0xaa   : > { %1159 = vmatpush3.msra.mxu1 %v483_v22  ;;  %1112 = vmatprep.subr.mxu0 %v426_v23 }
  0xab   : > { %1160 = vmatprep.subr.mxu1 %v1415_v6  ;;  %1113 = vmatpush3.msra.mxu0 %v378_v60 }
  0xac   : > { %1161 = vmatpush3.msra.mxu1 %v480_v24  ;;  %1114 = vmatprep.subr.mxu0 %v423_v25 }
  0xad   : > { %1162 = vmatprep.subr.mxu1 %v1415_v6  ;;  %1115 = vmatpush3.msra.mxu0 %v375_v63 }
  0xae   : > { %1163 = vmatpush3.msra.mxu1 %v477_v26  ;;  %1116 = vmatprep.subr.mxu0 %v420_v27 }
  0xaf   : > { %1164 = vmatprep.subr.mxu1 %v1415_v6  ;;  %1117 = vmatpush3.msra.mxu0 %v372_v28 }
  0xb0   : > { %1165 = vmatpush3.msra.mxu1 %v474_v29  ;;  %1118 = vmatprep.subr.mxu0 %v417_v30 }
  0xb1   : > { %1166 = vmatprep.subr.mxu1 %v1415_v6  ;;  %1119 = vmatpush3.msra.mxu0 %v369_v31 }
  0xb2   : > { %1167 = vmatpush3.msra.mxu1 %v471_v32  ;;  %1120 = vmatprep.subr.mxu0 %v414_v33 }
  0xb3   : > { %1168 = vmatprep.subr.mxu1 %v1415_v6  ;;  %1121 = vmatpush3.msra.mxu0 %v366_v34 }
  0xb4   : > { %1169 = vmatpush3.msra.mxu1 %v468_v35  ;;  %1122 = vmatprep.subr.mxu0 %v411_v36 }
  0xb5   : > { %1170 = vmatprep.subr.mxu1 %v1415_v6  ;;  %1123 = vmatpush3.msra.mxu0 %v363_v37 }
  0xb6   : > { %1171 = vmatpush3.msra.mxu1 %v465_v38  ;;  %1124 = vmatprep.subr.mxu0 %v408_v39 }
  0xb7   : > { %1172 = vmatprep.subr.mxu1 %v1415_v6  ;;  %1125 = vmatpush3.msra.mxu0 %v360_v40 }
  0xb8   : > { %1173 = vmatpush3.msra.mxu1 %v462_v41  ;;  %1126 = vmatprep.subr.mxu0 %v405_v42 }
  0xb9   : > { %1174 = vmatprep.subr.mxu1 %v1415_v6  ;;  %1127 = vmatpush3.msra.mxu0 %v357_v43 }
  0xba   : > { %1175 = vmatpush3.msra.mxu1 %v459_v44  ;;  %1128 = vmatprep.subr.mxu0 %v402_v45 }
  0xbb   : > { %1176 = vmatprep.subr.mxu1 %v1415_v6  ;;  %1129 = vmatpush3.msra.mxu0 %v354_v46 }
  0xbc   : > { %1177 = vmatpush3.msra.mxu1 %v456_v47  ;;  %1130 = vmatprep.subr.mxu0 %v399_v48 }
  0xbd   : > { %1178 = vmatprep.subr.mxu1 %v1415_v6  ;;  %1131 = vmatpush3.msra.mxu0 %v351_v49 }
  0xbe   : > { %1179 = vmatpush3.msra.mxu1 %v453_v50  ;;  %1132 = vmatprep.subr.mxu0 %v396_v51 }
  0xbf   : > { %1180 = vmatprep.subr.mxu1 %v1415_v6  ;;  %1133 = vmatpush3.msra.mxu0 %v348_v52 }
  0xc0   : > { %854 = vmatprep.mubr.f32.mxu0 %v1569_v3  ;;  %1181 = vmatpush3.msra.mxu1 %v450_v53  ;;  %v490_v3 = vld [vmem:[%s1650_s2] sm:$0x7] }
  0xc1   : > { %855 = vmatmul.mubr.f32.vlgmr.msra.gmra.mxu0 %v1573_v5  ;;  %1182 = vmatprep.subr.mxu1 %v1415_v6  ;;  %v498_v5 = vsub.s32 1, %v493_v57  ;;  %v495_v61 = vrot.slane %v490_v3, %v494_v58  ;;  %v503_v16 = vrot.slane %v490_v3, %v502_v14 }
  0xc2   : > { %1183 = vmatpush3.msra.mxu1 %v447_v54  ;;  %1186 = vmatprep.mubr.msk.f32.mxu1 %vm1416_vm0, %v1415_v6 }
  0xc3   : > { %1184 = vmatprep.subr.mxu1 %v1415_v6  ;;  %v499_v62 = vrot.slane %v490_v3, %v498_v5 }
  0xc4   : > { %1185 = vmatpush3.msra.mxu1 %v444_v55 }
  0xc5   : > { %1187 = vmatmul.mubr.f32.vlgmr.msra.gmra.mxu1 %v1578_v2 }
 0x13e   : > { %v573_v59 = vpop.f32.mrf.mxu0 }
 0x13f   : > { %v574_v4 = vadd.f32 %v573_v59, %v495_v61 }
 0x140   : > { %v575_v0 = vpop.f32.mrf.mxu0 }
 0x141   : > { %v644_v1 = vpop.f32.mrf.mxu1  ;;  %v576_v7 = vadd.f32 %v575_v0, %v499_v62 }
 0x142   : > { %v645_v8 = vadd.f32 %v644_v1, %v574_v4 }
 0x143   : > { %v646_v6 = vpop.f32.mrf.mxu1 }
 0x144   : > { %v647_v2 = vadd.f32 %v646_v6, %v576_v7 }
 0x15f   : > { %v715_v9 = vpop.f32.mrf.mxu0 }
 0x160   : > { %v716_v10 = vadd.f32 %v715_v9, %v645_v8 }
 0x161   : > { %v717_v11 = vpop.f32.mrf.mxu0 }
 0x162   : > { %930 = vst [vmem:[%s237_s26] sm:$0xff] %v716_v10  ;;  %v718_v12 = vadd.f32 %v717_v11, %v647_v2 }
 0x164   : > { %931 = vst [vmem:[%s237_s26 + $0x8] sm:$0xff] %v718_v12 }
 0x165   : > { %v1099_v13 = vpop.f32.mrf.mxu1 }
 0x167   : > { %v1100_v15 = vpop.f32.mrf.mxu1 }
 0x168   : > { %v1101_v17 = vadd.f32 %v1100_v15, %v1099_v13 }
 0x16a   : > { %v787_v20 = vadd.f32 %v1101_v17, %v503_v16 }
 0x181   : > { %v1134_v18 = vpop.f32.mrf.mxu0 }
 0x183   : > { %v1135_v19 = vpop.f32.mrf.mxu0 }
 0x184   : > { %v1136_v21 = vadd.f32 %v1135_v19, %v1134_v18 }
 0x185   : > { %v926_v22 = vpop.f32.mrf.mxu1 }
 0x186   : > { %v857_v23 = vadd.f32 %v1136_v21, %v787_v20 }
 0x187   : > { %v1188_v60 = vpop.f32.mrf.mxu1 }
 0x188   : > { %v927_v24 = vadd.f32 %v926_v22, %v857_v23 }
 0x18a   : > { %932 = vst [vmem:[%s237_s26 + $0x10] sm:$0xff] %v927_v24 }
 0x18b   : > { %1338 = shalt.err (!%p1335_p6)
}
 0x18c   : > { %s1339_s11 = scalar_lea.hbm %s948_s4, 384  ;;  %s1343_s25 = scalar_lea.hbm %s1651_s3, 768 }
 0x18d   : > { %p1340_p4 = scmp.ne.s32.totalorder %s948_s4, %s1339_s11  ;;  %p1344_p0 = scmp.lt.s32.totalorder %s948_s4, %s1651_s3 }
 0x18e   : > { %p1345_p3 = scmp.lt.s32.totalorder %s1343_s25, %s1339_s11 }
 0x18f   : > { %p1341_p9 = pnand %p1340_p4, %p1521_p13 }
 0x190   : > { %p1346_p1 = por %p1345_p3, %p1344_p0 }
 0x191   : > { %p1342_p12 = pneg %p1341_p9 }
 0x193   : > { %p1347_p8 = pnand %p1346_p1, %p1342_p12 }
 0x195   : > { %1350 = shalt.err (!%p1347_p8)
}
 0x196   : > { %1200 = dma.vmem_to_hbm [thread:$0]  (%p1521_p13), %s951_s29, 384, %s948_s4, %s934_s5  }
 0x197 PF: > { %s962_s24 = sand.u32 1, %s1389_s12   ;;  %p1662_p11 = scmp.ne.s32.totalorder %s1656_s23, 0 }
 0x198   : > { %s963_s26 = scalar_lea.sflag [#allocation4], %s962_s24 }
 0x199   : > { %p1211_p2 = pnand %p1060_p10, %p1662_p11 }
 0x19b   : > { %p1212_p5 = pneg %p1211_p2 }
 0x19d   : > { %1384 = dma.done.wait (%p1212_p5), %s963_s26, 384  }
 0x19e   : > { %1386 = vsyncadd (%p1212_p5), %s963_s26, 4294966912  ;;  %s20_s17 = sadd.s32 1, %s1409_s17   ;;  %s1663_s12 = smov %s1393_s13 }
 0x19f   : > { %p17_p7 = scmp.ge.s32.totalorder %s20_s17, 4   ;;  %s1664_s13 = smov %s1397_s14 }
 0x1a0   : > { %s1665_s14 = smov %s1530_s18  ;;  %s1666_s15 = smov %s1405_s16 }
 0x1a1   : > { %s1667_s16 = smov %s1669_s28  ;;  %19 = sbr.rel (!%p17_p7) target bundleno = 7 (0x7), region = 85 }
 0x1a6   :  { %968 = vsyncpa [#allocation3], 1 }
 0x1a7   :  { %970 = vsyncpa [#allocation3 + $0x1], 1 }
 0x1a8   :  { %971 = vsyncpa [#allocation6], 1 }
 0x1a9   :  { %972 = vsyncpa [#allocation4], 1 }
 0x1aa   :  { %974 = vsyncpa [#allocation4 + $0x1], 1 }

</bundles_post_ra>
